<compile_context>
chip_gen: v7x
topology: tpu7x:2x2x1
jax: 0.10.0
libtpu: 0.0.40
codegen_flags: <defaults>
</compile_context>

<pallas_src>
import jax
import jax.numpy as jnp
from jax.experimental import pallas as pl
from jax.experimental.pallas import tpu as pltpu


def _round_up(x, m):
    return ((x + m - 1) // m) * m


def _cdiv(a, b):
    return (a + b - 1) // b


# ----------------------------------------------------------------------------
# Kernel
# ----------------------------------------------------------------------------
def _bottle_classifier_kernel(x_ref, w1_ref, shift_ref, w2_ref, b2_ref, o_ref):
    # Linear1 with BN folded into W1/shift.  bf16 MXU inputs, f32 accumulation.
    h = jnp.dot(x_ref[...], w1_ref[...], preferred_element_type=jnp.float32)
    h = h + shift_ref[...]                     # f32 VPU add (free under MXU slack)
    h = jnp.maximum(h, 0.1 * h)                # LeakyReLU(0.1): single vmax, f32
    # Dropout(p=0.5) -> identity in eval mode
    out = jnp.dot(h.astype(w2_ref.dtype), w2_ref[...],
                  preferred_element_type=jnp.float32)
    o_ref[...] = (out + b2_ref[...]).astype(o_ref.dtype)


# ----------------------------------------------------------------------------
# One-time parameter preparation (hoisted out of the forward path)
# ----------------------------------------------------------------------------
def prepare_params(w1, b1, bn_scale, bn_shift, w2, b2, *, compute_dtype=jnp.bfloat16):
    """Fold BN into Linear1, pad every feature dim to a lane-dense multiple of
    128 and cast the matmul operands to `compute_dtype`.  Call once per model.

    w1: (bottle_dim, in_dim)   b1: (bottle_dim,)
    bn_scale = gamma / sqrt(var + eps)          (bottle_dim,)
    bn_shift = beta - running_mean * bn_scale   (bottle_dim,)
    w2: (out_dim, bottle_dim)  b2: (out_dim,)
    """
    bottle_dim, in_dim = w1.shape
    out_dim = w2.shape[0]

    in_pad = _round_up(in_dim, 128)
    bottle_pad = _round_up(bottle_dim, 128)
    out_pad = _round_up(out_dim, 128)

    # Fold BN in f32 BEFORE the bf16 downcast (avoids double rounding):
    #   scale*(x@W1^T + b1) + shift  ==  x@(W1^T*scale) + (b1*scale + shift)
    w1_f = (w1.astype(jnp.float32).T * bn_scale.astype(jnp.float32)[None, :])
    shift = (b1.astype(jnp.float32) * bn_scale.astype(jnp.float32)
             + bn_shift.astype(jnp.float32))

    w1_p = jnp.zeros((in_pad, bottle_pad), compute_dtype)
    w1_p = w1_p.at[:in_dim, :bottle_dim].set(w1_f.astype(compute_dtype))
    shift_p = jnp.zeros((1, bottle_pad), jnp.float32).at[0, :bottle_dim].set(shift)

    w2_p = jnp.zeros((bottle_pad, out_pad), compute_dtype)
    w2_p = w2_p.at[:bottle_dim, :out_dim].set(w2.astype(jnp.float32).T.astype(compute_dtype))
    b2_p = jnp.zeros((1, out_pad), jnp.float32).at[0, :out_dim].set(b2.astype(jnp.float32))

    return {
        "w1": w1_p, "shift": shift_p, "w2": w2_p, "b2": b2_p,
        "in_dim": in_dim, "out_dim": out_dim,
    }


# ----------------------------------------------------------------------------
# Per-generation tuning
# ----------------------------------------------------------------------------
def _device_defaults():
    """(vmem_limit_bytes, default batch tile) chosen per TPU generation."""
    vmem_bytes = None
    try:
        info = pltpu.get_tpu_info()
        vmem_bytes = getattr(info, "vmem_capacity_bytes", None)
    except Exception:
        vmem_bytes = None
    if vmem_bytes is not None and vmem_bytes > 96 * 1024 * 1024:
        # v5e / v6e: 128 MiB physical VMEM -> bigger tiles, higher scoped limit.
        return 100 * 1024 * 1024, 512
    # v7x (64 MiB VMEM) or unknown: conservative settings that fit everywhere.
    return 48 * 1024 * 1024, 256


def _choose_batch_tile(b_pad, tb_max):
    tb = min(tb_max, b_pad)
    tb = max(8, (tb // 8) * 8)                 # sublane-aligned
    # Ensure >= 2 grid steps when possible so v7x's 2nd TensorCore gets work.
    if b_pad > 8 and tb >= b_pad:
        tb = max(8, ((b_pad // 2 + 7) // 8) * 8)
    return tb


# ----------------------------------------------------------------------------
# Forward wrapper
# ----------------------------------------------------------------------------
def bottle_classifier(x, params, *, batch_tile=None, out_dtype=None):
    """Fused BottleClassifier forward (eval mode).  `params` from prepare_params."""
    w1_p, shift_p, w2_p, b2_p = params["w1"], params["shift"], params["w2"], params["b2"]
    in_dim, out_dim = params["in_dim"], params["out_dim"]
    in_pad, bottle_pad = w1_p.shape
    out_pad = w2_p.shape[1]
    compute_dtype = w1_p.dtype
    out_dtype = out_dtype if out_dtype is not None else x.dtype

    B = x.shape[0]
    assert x.shape[1] == in_dim

    vmem_limit, tb_default = _device_defaults()
    tb_max = batch_tile if batch_tile is not None else tb_default

    # Pad B only to the 8-row sublane and in_dim to the 128 lane; this is fused
    # with the bf16 cast of x (which is a copy anyway), NOT a full-tile pad.
    b_pad = _round_up(B, 8)
    if (b_pad, in_pad) != (B, in_dim) or x.dtype != compute_dtype:
        x_p = jnp.zeros((b_pad, in_pad), compute_dtype)
        x_p = x_p.at[:B, :in_dim].set(x.astype(compute_dtype))
    else:
        x_p = x

    tb = _choose_batch_tile(b_pad, tb_max)
    grid = _cdiv(b_pad, tb)                    # partial trailing block allowed

    out = pl.pallas_call(
        _bottle_classifier_kernel,
        out_shape=jax.ShapeDtypeStruct((b_pad, out_pad), out_dtype),
        grid_spec=pltpu.PrefetchScalarGridSpec(
            num_scalar_prefetch=0,
            grid=(grid,),
            in_specs=[
                pl.BlockSpec((tb, in_pad), lambda i: (i, 0)),            # x tile (pipelined)
                pl.BlockSpec((in_pad, bottle_pad), lambda i: (0, 0)),    # W1'   (resident)
                pl.BlockSpec((1, bottle_pad), lambda i: (0, 0)),         # shift (resident, f32)
                pl.BlockSpec((bottle_pad, out_pad), lambda i: (0, 0)),   # W2    (resident)
                pl.BlockSpec((1, out_pad), lambda i: (0, 0)),            # b2    (resident, f32)
            ],
            out_specs=pl.BlockSpec((tb, out_pad), lambda i: (i, 0)),     # lane-dense out tile
        ),
        compiler_params=pltpu.CompilerParams(
            dimension_semantics=("parallel",),   # batch axis -> both TCs on v7x
            vmem_limit_bytes=vmem_limit,
        ),
    )(x_p, w1_p, shift_p, w2_p, b2_p)

    return out[:B, :out_dim]


# ----------------------------------------------------------------------------
# Init + reference (mirrors weights_init_kaiming / weights_init_classifier)
# ----------------------------------------------------------------------------
def init_params(key, in_dim, out_dim, bottle_dim):
    k1, k2, k3 = jax.random.split(key, 3)
    # bottle Linear: kaiming_normal_(a=0, mode='fan_out'); bias = 0
    w1 = jax.random.normal(k1, (bottle_dim, in_dim), jnp.float32) * jnp.sqrt(2.0 / bottle_dim)
    b1 = jnp.zeros((bottle_dim,), jnp.float32)
    # BatchNorm1d: weight ~ N(1, 0.02), bias = 0, running stats (0, 1)
    gamma = 1.0 + 0.02 * jax.random.normal(k2, (bottle_dim,), jnp.float32)
    beta = jnp.zeros((bottle_dim,), jnp.float32)
    running_mean = jnp.zeros((bottle_dim,), jnp.float32)
    running_var = jnp.ones((bottle_dim,), jnp.float32)
    eps = 1e-5
    bn_scale = gamma / jnp.sqrt(running_var + eps)
    bn_shift = beta - running_mean * bn_scale
    # classifier Linear: weight ~ N(0, 0.001), bias = 0
    w2 = 0.001 * jax.random.normal(k3, (out_dim, bottle_dim), jnp.float32)
    b2 = jnp.zeros((out_dim,), jnp.float32)
    return w1, b1, bn_scale, bn_shift, w2, b2


def reference(x, w1, b1, bn_scale, bn_shift, w2, b2):
    h = x @ w1.T + b1
    h = h * bn_scale + bn_shift
    h = jnp.where(h > 0, h, 0.1 * h)
    return h @ w2.T + b2


if __name__ == "__main__":
    B, IN_DIM, OUT_DIM, BOTTLE_DIM = 8, 64, 32, 128

    key = jax.random.PRNGKey(0)
    kx, kp = jax.random.split(key)
    x = jax.random.normal(kx, (B, IN_DIM), jnp.float32)
    w1, b1, bn_scale, bn_shift, w2, b2 = init_params(kp, IN_DIM, OUT_DIM, BOTTLE_DIM)

    # One-time weight preparation (hoisted out of the forward path).
    params = prepare_params(w1, b1, bn_scale, bn_shift, w2, b2)

    out = bottle_classifier(x, params)
    out = jax.block_until_ready(out)
    assert out.shape == (B, OUT_DIM)

    # Tight check vs a reference that applies the same bf16 input rounding
    # (f32 accumulation) as the kernel.
    in_pad = params["w1"].shape[0]
    x_bf = jnp.zeros((B, in_pad), jnp.bfloat16).at[:, :IN_DIM].set(x.astype(jnp.bfloat16))
    h_e = x_bf.astype(jnp.float32) @ params["w1"].astype(jnp.float32) + params["shift"]
    h_e = jnp.maximum(h_e, 0.1 * h_e)
    ref_bf16 = (h_e.astype(jnp.bfloat16).astype(jnp.float32)
                @ params["w2"].astype(jnp.float32) + params["b2"])[:, :OUT_DIM]
    assert jnp.allclose(out, ref_bf16, atol=1e-4, rtol=1e-4)

    # Loose semantic check vs the pure-f32 reference (bf16 rounding ~0.5% rel).
    ref_f32 = reference(x, w1, b1, bn_scale, bn_shift, w2, b2)
    rel_err = jnp.max(jnp.abs(out - ref_f32)) / (jnp.max(jnp.abs(ref_f32)) + 1e-12)
    assert rel_err < 2e-2

    print("KERNEL_OK")
</pallas_src>

<mosaic_0001>
module attributes {stable_mosaic.version = 11 : i64} {
  func.func @_bottle_classifier_kernel(%arg0: i32, %arg1: memref<8x128xbf16, #tpu.memory_space<vmem>>, %arg2: memref<128x128xbf16, #tpu.memory_space<vmem>>, %arg3: memref<1x128xf32, #tpu.memory_space<vmem>>, %arg4: memref<128x128xbf16, #tpu.memory_space<vmem>>, %arg5: memref<1x128xf32, #tpu.memory_space<vmem>>, %arg6: memref<8x128xf32, #tpu.memory_space<vmem>>) attributes {dimension_semantics = [#tpu.dimension_semantics<parallel>], iteration_bounds = array<i64: 1>, scalar_prefetch = 0 : i64, scratch_operands = 0 : i64, tpu.core_type = #tpu.core_type<tc>, window_params = [{transform_indices = @transform_0, window_bounds = array<i64: 8, 128>}, {pipeline_mode = #tpu.pipeline_mode<synchronous>, transform_indices = @transform_1, window_bounds = array<i64: 128, 128>}, {pipeline_mode = #tpu.pipeline_mode<synchronous>, transform_indices = @transform_2, window_bounds = array<i64: 1, 128>}, {pipeline_mode = #tpu.pipeline_mode<synchronous>, transform_indices = @transform_3, window_bounds = array<i64: 128, 128>}, {pipeline_mode = #tpu.pipeline_mode<synchronous>, transform_indices = @transform_4, window_bounds = array<i64: 1, 128>}, {transform_indices = @transform_5, window_bounds = array<i64: 8, 128>}]} {
    %c0 = arith.constant 0 : index
    %c0_0 = arith.constant 0 : index
    %0 = vector.load %arg1[%c0, %c0_0] : memref<8x128xbf16, #tpu.memory_space<vmem>>, vector<8x128xbf16>
    %c0_1 = arith.constant 0 : index
    %c0_2 = arith.constant 0 : index
    %1 = vector.load %arg2[%c0_1, %c0_2] : memref<128x128xbf16, #tpu.memory_space<vmem>>, vector<128x128xbf16>
    %cst = arith.constant dense<0.000000e+00> : vector<8x128xf32>
    %2 = tpu.matmul %0, %1, %cst {dimension_numbers = #tpu.dot_dimension_numbers<[1], [0], [0], [1], [0, 0, 1, 1], [], []>} : vector<8x128xbf16>, vector<128x128xbf16>, vector<8x128xf32> -> vector<8x128xf32>
    %c0_3 = arith.constant 0 : index
    %c0_4 = arith.constant 0 : index
    %3 = vector.load %arg3[%c0_3, %c0_4] : memref<1x128xf32, #tpu.memory_space<vmem>>, vector<1x128xf32>
    %4 = vector.broadcast %3 : vector<1x128xf32> to vector<8x128xf32>
    %5 = arith.addf %2, %4 : vector<8x128xf32>
    %cst_5 = arith.constant 1.000000e-01 : f32
    %6 = vector.broadcast %cst_5 : f32 to vector<8x128xf32>
    %7 = arith.mulf %6, %5 : vector<8x128xf32>
    %8 = arith.maximumf %5, %7 : vector<8x128xf32>
    %9 = arith.truncf %8 : vector<8x128xf32> to vector<8x128xbf16>
    %c0_6 = arith.constant 0 : index
    %c0_7 = arith.constant 0 : index
    %10 = vector.load %arg4[%c0_6, %c0_7] : memref<128x128xbf16, #tpu.memory_space<vmem>>, vector<128x128xbf16>
    %cst_8 = arith.constant dense<0.000000e+00> : vector<8x128xf32>
    %11 = tpu.matmul %9, %10, %cst_8 {dimension_numbers = #tpu.dot_dimension_numbers<[1], [0], [0], [1], [0, 0, 1, 1], [], []>} : vector<8x128xbf16>, vector<128x128xbf16>, vector<8x128xf32> -> vector<8x128xf32>
    %c0_9 = arith.constant 0 : index
    %c0_10 = arith.constant 0 : index
    %12 = vector.load %arg5[%c0_9, %c0_10] : memref<1x128xf32, #tpu.memory_space<vmem>>, vector<1x128xf32>
    %13 = vector.broadcast %12 : vector<1x128xf32> to vector<8x128xf32>
    %14 = arith.addf %11, %13 : vector<8x128xf32>
    %c0_11 = arith.constant 0 : index
    %c0_12 = arith.constant 0 : index
    %15 = vector.load %arg6[%c0_11, %c0_12] : memref<8x128xf32, #tpu.memory_space<vmem>>, vector<8x128xf32>
    tpu.vector_store %arg6[%c0_11, %c0_12], %14 {strides = array<i32>} : memref<8x128xf32, #tpu.memory_space<vmem>>, vector<8x128xf32>,
    return
  }
  func.func @transform_0(%arg0: i32) -> (i32, i32) {
    %c0_i32 = arith.constant 0 : i32
    %c0_i32_0 = arith.constant 0 : i32
    return %arg0, %c0_i32 : i32, i32
  }
  func.func @transform_1(%arg0: i32) -> (i32, i32) {
    %c0_i32 = arith.constant 0 : i32
    %c0_i32_0 = arith.constant 0 : i32
    %c0_i32_1 = arith.constant 0 : i32
    return %c0_i32, %c0_i32_0 : i32, i32
  }
  func.func @transform_2(%arg0: i32) -> (i32, i32) {
    %c0_i32 = arith.constant 0 : i32
    %c0_i32_0 = arith.constant 0 : i32
    %c0_i32_1 = arith.constant 0 : i32
    return %c0_i32, %c0_i32_0 : i32, i32
  }
  func.func @transform_3(%arg0: i32) -> (i32, i32) {
    %c0_i32 = arith.constant 0 : i32
    %c0_i32_0 = arith.constant 0 : i32
    %c0_i32_1 = arith.constant 0 : i32
    return %c0_i32, %c0_i32_0 : i32, i32
  }
  func.func @transform_4(%arg0: i32) -> (i32, i32) {
    %c0_i32 = arith.constant 0 : i32
    %c0_i32_0 = arith.constant 0 : i32
    %c0_i32_1 = arith.constant 0 : i32
    return %c0_i32, %c0_i32_0 : i32, i32
  }
  func.func @transform_5(%arg0: i32) -> (i32, i32) {
    %c0_i32 = arith.constant 0 : i32
    %c0_i32_0 = arith.constant 0 : i32
    return %arg0, %c0_i32 : i32, i32
  }
}

</mosaic_0001>

<bundles_post_ra>
// kernel: tpu_custom_call.1
= control target key start
LH: loop header
LB: loop body
LE: loop exit
PB: predicated region body
PF: predicated region fallthrough
CT: control target
= control target key end

     0   :  { %10 = vsyncpa [#allocation3], 0  ;;  %s596_s0 = inlined_call_operand.hbm [shape: bf16[8,128], index: 0, kind: input, shape index: {}]   ;;  %s597_s1 = inlined_call_operand.hbm [shape: bf16[128,128], index: 1, kind: input, shape index: {}]   ;;  %s598_s2 = inlined_call_operand.vmem [shape: f32[1,128], index: 2, kind: input, shape index: {}]   ;;  %s599_s3 = inlined_call_operand.hbm [shape: bf16[128,128], index: 3, kind: input, shape index: {}]   ;;  %s600_s4 = inlined_call_operand.vmem [shape: f32[1,128], index: 4, kind: input, shape index: {}]   ;;  %s601_s5 = inlined_call_operand.hbm [shape: f32[8,128], index: 5, kind: output, shape index: {}]  }
   0x1   :  { %11 = vsyncpa [#allocation6], 0 }
   0x2   :  { %12 = vsyncpa [#allocation4], 0  ;;  %s498_s18 = smov [#allocation5]   ;;  %s404_s22 = scalar_lea.hbm %s597_s1, 1024 }
   0x3   :  { %s28_s19 = sshll.u32 %s498_s18, 4  ;;  %p405_p0 = scmp.ne.s32.totalorder %s597_s1, %s404_s22  ;;  %s29_s19 = int_to_ptr.vmem [resolvable:$true] %s28_s19 }
   0x4   :  { %p408_p1 = scmp.lt.u32.totalorder %s404_s22, %s597_s1 }
   0x6   :  { %p410_p2 = pnand %p408_p1, %p405_p0 }
   0x8   :  { %413 = shalt.err (!%p410_p2)
}
   0x9   :  { %s414_s27 = scalar_lea.vmem %s29_s19, 1024  ;;  %p419_p4 = scmp.lt.s32.totalorder %s29_s19, %s29_s19 }
   0xa   :  { %p415_p3 = scmp.ne.s32.totalorder %s29_s19, %s414_s27  ;;  %p420_p5 = scmp.lt.s32.totalorder %s414_s27, %s414_s27 }
   0xc   :  { %p421_p6 = por %p420_p5, %p419_p4 }
   0xe   :  { %p422_p7 = pnand %p421_p6, %p415_p3 }
  0x10   :  { %425 = shalt.err (!%p422_p7)
}
  0x11   :  { %s499_s28 = smov 64   ;;  %s500_s29 = smov 4  }
  0x12   :  { %34 = dma.hbm_to_vmem [thread:$0]  %s597_s1, 1024, %s29_s19, [#allocation6], %s499_s28, %s499_s28, %s500_s29  }
  0x13   :  { %s501_s7 = smov [#allocation2]   ;;  %s502_s9 = smov [#allocation7]  }
  0x14   :  { %s19_s8 = sshll.u32 %s501_s7, 4  ;;  %s42_s10 = sshll.u32 %s502_s9, 4  ;;  %s20_s8 = int_to_ptr.vmem [resolvable:$true] %s19_s8  ;;  %s43_s10 = int_to_ptr.vmem [resolvable:$true] %s42_s10 }
  0x15   :  { %s426_s13 = scalar_lea.hbm %s596_s0, 64 }
  0x16   :  { %p427_p8 = scmp.ne.s32.totalorder %s596_s0, %s426_s13  ;;  %p430_p9 = scmp.lt.u32.totalorder %s426_s13, %s596_s0 }
  0x18   :  { %p432_p10 = pnand %p430_p9, %p427_p8 }
  0x1a   :  { %435 = shalt.err (!%p432_p10)
}
  0x1b   :  { %s436_s1 = scalar_lea.vmem %s20_s8, 64  ;;  %p441_p12 = scmp.lt.s32.totalorder %s20_s8, %s20_s8 }
  0x1c   :  { %p437_p11 = scmp.ne.s32.totalorder %s20_s8, %s436_s1  ;;  %p442_p13 = scmp.lt.s32.totalorder %s436_s1, %s436_s1 }
  0x1e   :  { %p443_p0 = por %p442_p13, %p441_p12 }
  0x20   :  { %p444_p1 = pnand %p443_p0, %p437_p11 }
  0x22   :  { %447 = shalt.err (!%p444_p1)
}
  0x23   :  { %22 = dma.hbm_to_vmem [thread:$0]  %s596_s0, 64, %s20_s8, [#allocation3]  }
  0x24   :  { %s448_s22 = scalar_lea.hbm %s599_s3, 1024 }
  0x25   :  { %p449_p2 = scmp.ne.s32.totalorder %s599_s3, %s448_s22  ;;  %p452_p3 = scmp.lt.u32.totalorder %s448_s22, %s599_s3 }
  0x27   :  { %p454_p4 = pnand %p452_p3, %p449_p2 }
  0x29   :  { %457 = shalt.err (!%p454_p4)
}
  0x2a   :  { %s458_s27 = scalar_lea.vmem %s43_s10, 1024  ;;  %p463_p6 = scmp.lt.s32.totalorder %s43_s10, %s43_s10 }
  0x2b   :  { %p459_p5 = scmp.ne.s32.totalorder %s43_s10, %s458_s27  ;;  %p464_p7 = scmp.lt.s32.totalorder %s458_s27, %s458_s27 }
  0x2d   :  { %p465_p8 = por %p464_p7, %p463_p6 }
  0x2f   :  { %p466_p9 = pnand %p465_p8, %p459_p5 }
  0x31   :  { %469 = shalt.err (!%p466_p9)
}
  0x32   :  { %48 = dma.hbm_to_vmem [thread:$0]  %s599_s3, 1024, %s43_s10, [#allocation6], %s499_s28, %s499_s28, %s500_s29  }
  0x33   :  { %492 = dma.done.wait [#allocation3], 64  }
  0x34   :  { %493 = vsyncadd [#allocation3], 4294967232 }
  0x35   :  { %494 = dma.done.wait [#allocation6], 2048  }
  0x36   :  { %495 = vsyncadd [#allocation6], 4294965248  ;;  %v503_v0 = vmov 0.0   ;;  %vm504_vm0 = vmmov 0   ;;  %v388_v1 = vld [vmem:[#allocation5] sm:$0xff]   ;;  %v389_v2 = vld [vmem:[#allocation5 + $0x8] sm:$0xff]  }
  0x37   :  { %340 = vmatprep.subr.bf16.mxu0 %v503_v0  ;;  %356 = vmatprep.mubr.msk.bf16.mxu0 %vm504_vm0, %v503_v0  ;;  %v390_v3 = vld [vmem:[#allocation5 + $0x10] sm:$0xff]   ;;  %v396_v4 = vld [vmem:[#allocation7] sm:$0xff]   ;;  %v391_v5 = vld [vmem:[#allocation5 + $0x18] sm:$0xff]   ;;  %s505_s7 = smov [#allocation8]  }
  0x38   :  { %360 = vmatprep.subr.bf16.mxu1 %v503_v0  ;;  %376 = vmatprep.mubr.msk.bf16.mxu1 %vm504_vm0, %v503_v0  ;;  %v397_v6 = vld [vmem:[#allocation7 + $0x8] sm:$0xff]   ;;  %v392_v7 = vld [vmem:[#allocation5 + $0x20] sm:$0xff]   ;;  %v398_v8 = vld [vmem:[#allocation7 + $0x10] sm:$0xff]   ;;  %s294_s8 = sshll.u32 %s505_s7, 4  ;;  %s295_s8 = int_to_ptr.vmem [resolvable:$true] %s294_s8 }
  0x39   :  { %341 = vmatpush3.bf16.msra.mxu0 %v388_v1  ;;  %361 = vmatpush3.bf16.msra.mxu1 %v396_v4  ;;  %v393_v9 = vld [vmem:[#allocation5 + $0x28] sm:$0xff]   ;;  %v399_v10 = vld [vmem:[#allocation7 + $0x18] sm:$0xff]   ;;  %v394_v11 = vld [vmem:[#allocation5 + $0x30] sm:$0xff]   ;;  %p475_p11 = scmp.lt.s32.totalorder %s295_s8, %s295_s8 }
  0x3a   :  { %342 = vmatprep.subr.bf16.mxu0 %v503_v0  ;;  %362 = vmatprep.subr.bf16.mxu1 %v503_v0  ;;  %v400_v12 = vld [vmem:[#allocation7 + $0x20] sm:$0xff]   ;;  %v395_v13 = vld [vmem:[#allocation5 + $0x38] sm:$0xff]   ;;  %v401_v14 = vld [vmem:[#allocation7 + $0x28] sm:$0xff]  }
  0x3b   :  { %v61_v15 = vld [vmem:[#allocation2] sm:$0xf]  ;;  %v402_v16 = vld [vmem:[#allocation7 + $0x30] sm:$0xff]  }
  0x3c   :  { %v403_v17 = vld [vmem:[#allocation7 + $0x38] sm:$0xff]  }
  0x3d   :  { %343 = vmatpush3.bf16.msra.mxu0 %v389_v2  ;;  %363 = vmatpush3.bf16.msra.mxu1 %v397_v6  ;;  %v304_v18 = vld [vmem:[%s598_s2] ss:$0 sm:$0xff]  ;;  %s470_s2 = scalar_lea.vmem %s295_s8, 128 }
  0x3e   :  { %344 = vmatprep.subr.bf16.mxu0 %v503_v0  ;;  %364 = vmatprep.subr.bf16.mxu1 %v503_v0  ;;  %v313_v27 = vld [vmem:[%s600_s4] ss:$0 sm:$0xff]  ;;  %p471_p10 = scmp.ne.s32.totalorder %s295_s8, %s470_s2  ;;  %p476_p12 = scmp.lt.s32.totalorder %s470_s2, %s470_s2 }
  0x40   :  { %p477_p13 = por %p476_p12, %p475_p11 }
  0x41   :  { %345 = vmatpush3.bf16.msra.mxu0 %v390_v3  ;;  %365 = vmatpush3.bf16.msra.mxu1 %v398_v8 }
  0x42   :  { %346 = vmatprep.subr.bf16.mxu0 %v503_v0  ;;  %366 = vmatprep.subr.bf16.mxu1 %v503_v0  ;;  %p478_p0 = pnand %p477_p13, %p471_p10 }
  0x45   :  { %347 = vmatpush3.bf16.msra.mxu0 %v391_v5  ;;  %367 = vmatpush3.bf16.msra.mxu1 %v399_v10 }
  0x46   :  { %348 = vmatprep.subr.bf16.mxu0 %v503_v0  ;;  %368 = vmatprep.subr.bf16.mxu1 %v503_v0 }
  0x49   :  { %349 = vmatpush3.bf16.msra.mxu0 %v392_v7  ;;  %369 = vmatpush3.bf16.msra.mxu1 %v400_v12 }
  0x4a   :  { %350 = vmatprep.subr.bf16.mxu0 %v503_v0  ;;  %370 = vmatprep.subr.bf16.mxu1 %v503_v0 }
  0x4d   :  { %351 = vmatpush3.bf16.msra.mxu0 %v393_v9  ;;  %371 = vmatpush3.bf16.msra.mxu1 %v401_v14 }
  0x4e   :  { %352 = vmatprep.subr.bf16.mxu0 %v503_v0  ;;  %372 = vmatprep.subr.bf16.mxu1 %v503_v0 }
  0x51   :  { %353 = vmatpush3.bf16.msra.mxu0 %v394_v11  ;;  %373 = vmatpush3.bf16.msra.mxu1 %v402_v16 }
  0x52   :  { %354 = vmatprep.subr.bf16.mxu0 %v503_v0  ;;  %374 = vmatprep.subr.bf16.mxu1 %v503_v0 }
  0x55   :  { %355 = vmatpush3.bf16.msra.mxu0 %v395_v13  ;;  %375 = vmatpush3.bf16.msra.mxu1 %v403_v17 }
  0x58   :  { %357 = vmatmul.mubr.bf16.vlgmr.msra.gmra.mrb[0].mxu0 %v61_v15 }
 0x12b   :  { %v167_v19 = vpop.f32.mrb[0].mxu0 }
 0x12c   :  { %v168_v20 = vadd.f32 %v304_v18, %v167_v19  ;;  %v358_v21 = vpop.f32.mrb[1].mxu0 }
 0x12d   :  { %v170_v22 = vpop.f32.mrb[2].mxu0 }
 0x12e   :  { %v173_v23 = vmul.f32 0.1, %v168_v20  ;;  %v359_v24 = vpop.f32.mrb[3].mxu0 }
 0x130   :  { %v174_v25 = vmax.f32 %v168_v20, %v173_v23 }
 0x132   :  { %v175_v26 = vpack.c.bf16 %v174_v25, %v174_v25 }
 0x134   :  { %377 = vmatmul.mubr.bf16.vlgmr.msra.gmra.mrb[0].mxu1 %v175_v26 }
 0x207   :  { %v281_v28 = vpop.f32.mrb[0].mxu1 }
 0x208   :  { %v282_v29 = vadd.f32 %v313_v27, %v281_v28  ;;  %v378_v30 = vpop.f32.mrb[1].mxu1 }
 0x209   :  { %v284_v31 = vpop.f32.mrb[2].mxu1 }
 0x20a   :  { %287 = vst [vmem:[#allocation8] sm:$0xff] %v282_v29  ;;  %v379_v32 = vpop.f32.mrb[3].mxu1 }
 0x20b   :  { %481 = shalt.err (!%p478_p0)
}
 0x20c   :  { %s482_s4 = scalar_lea.hbm %s601_s5, 128 }
 0x20d   :  { %p483_p1 = scmp.ne.s32.totalorder %s601_s5, %s482_s4  ;;  %p486_p2 = scmp.lt.u32.totalorder %s482_s4, %s601_s5 }
 0x20f   :  { %p488_p3 = pnand %p486_p2, %p483_p1 }
 0x211   :  { %491 = shalt.err (!%p488_p3)
}
 0x212   :  { %297 = dma.vmem_to_hbm [thread:$0]  %s295_s8, 128, %s601_s5, [#allocation4]  }
 0x213   :  { %496 = dma.done.wait [#allocation4], 128  }
 0x214   :  { %497 = vsyncadd [#allocation4], 4294967168 }
 0x215   :  { %301 = vsyncpa [#allocation3], 1 }
 0x216   :  { %302 = vsyncpa [#allocation6], 1 }
 0x217   :  { %303 = vsyncpa [#allocation4], 1 }

</bundles_post_ra>
